<compile_context>
chip_gen: v7x
topology: tpu7x:2x2x1
jax: 0.10.0
libtpu: 0.0.40
codegen_flags: <defaults>
</compile_context>

<pallas_src>
import functools

import jax
import jax.numpy as jnp
from jax import lax
from jax.experimental import pallas as pl
from jax.experimental.pallas import tpu as pltpu

_LANE = 128
_MAX_TL = 1024                      # x-side L tile cap (out/s tile is tl*r lanes)
_MAX_TB = 1024
_VMEM_BUDGET_BYTES = 24 * 1024 * 1024   # live-tile budget used for tile picking
_VMEM_LIMIT_BYTES = 48 * 1024 * 1024    # raise v5e's 16 MiB default scoped limit


# ----------------------------- kernels ------------------------------------ #

def _upsample_kernel(x_ref, s_ref, e_ref, o_ref, *, r, chunk, l_total, ragged):
    # x_ref: (tb, tl)  s_ref/o_ref: (tb, tl*r)  e_ref: (chunk, chunk*r) 0/1.
    tl = x_ref.shape[-1]
    for c in range(tl // chunk):
        xc = x_ref[:, c * chunk:(c + 1) * chunk]
        if ragged:
            li = pl.program_id(1)
            col = (li * tl + c * chunk
                   + lax.broadcasted_iota(jnp.int32, xc.shape, 1))
            xc = jnp.where(col < l_total, xc, jnp.zeros_like(xc))
        # x @ E == repeat_interleave(x, r, axis=-1): exactly one 1.0 per column.
        xe = jnp.dot(xc, e_ref[...], preferred_element_type=jnp.float32)
        sc = s_ref[:, c * chunk * r:(c + 1) * chunk * r]
        o_ref[:, c * chunk * r:(c + 1) * chunk * r] = (xe + sc).astype(o_ref.dtype)


def _downsample_kernel(x_ref, s_ref, p_ref, o_ref, *, r, chunk, lr_total, ragged):
    # x_ref/s_ref: (tb, tl*r)  p_ref: (chunk*r, chunk) 0/1  o_ref: (tb, tl).
    tl = o_ref.shape[-1]
    inv_r = 1.0 / r
    for c in range(tl // chunk):
        lo, hi = c * chunk * r, (c + 1) * chunk * r
        d = x_ref[:, lo:hi] - s_ref[:, lo:hi]
        if ragged:
            li = pl.program_id(1)
            col = (li * (tl * r) + lo
                   + lax.broadcasted_iota(jnp.int32, d.shape, 1))
            d = jnp.where(col < lr_total, d, jnp.zeros_like(d))
        pooled = jnp.dot(d, p_ref[...], preferred_element_type=jnp.float32)
        o_ref[:, c * chunk:(c + 1) * chunk] = (pooled * inv_r).astype(o_ref.dtype)


# --------------------------- tile selection -------------------------------- #

def _sublane_mult(itemsize):
    if itemsize >= 4:
        return 8
    if itemsize == 2:
        return 16
    return 32


def _largest_aligned_divisor(dim, cap, mult):
    """Largest t <= cap with t % mult == 0 and dim % t == 0, else None."""
    t = min(cap, dim)
    t -= t % mult
    while t >= mult:
        if dim % t == 0:
            return t
        t -= mult
    return None


def _pick_tiles(B, L, r, itemsize):
    smult = _sublane_mult(itemsize)
    # Live VMEM bytes per (tb*tl) element: double-buffered x + s + out blocks,
    # plus the f32 matmul intermediate.  (One-hot constant is tiny, ignored.)
    per_elem = 2 * itemsize * (1 + 2 * r) + 4 * r

    # L tile: lane axis; multiples of 128 so the MXU chunking stays aligned.
    tl = _largest_aligned_divisor(L, _MAX_TL, _LANE)
    ragged_l = False
    if tl is None:
        if L <= _MAX_TL:
            tl = L                       # full-dim block is always legal
        else:
            tl = _MAX_TL                 # ragged edge, masked inside the kernel
            ragged_l = True

    # B tile: sublane axis; respect dtype minimum sublane tile; VMEM budget.
    tb_cap = max(smult, min(_MAX_TB, _VMEM_BUDGET_BYTES // max(1, tl * per_elem)))
    tb_cap -= tb_cap % smult
    tb_cap = max(tb_cap, smult)
    tb = _largest_aligned_divisor(B, tb_cap, smult)
    if tb is None:
        tb = B if B <= tb_cap else tb_cap   # ragged B is safe (rows independent)

    gb = pl.cdiv(B, tb)
    gl = pl.cdiv(L, tl)
    # v7x has 2 TensorCores: make sure at least one parallel axis has >= 2 steps.
    if gb * gl == 1 and tl % (2 * _LANE) == 0:
        tl //= 2
        gl = 2
    return tb, tl, gb, gl, ragged_l


# ------------------------------ wrapper ------------------------------------ #

def upsample_flow(x, s, scale_factor=4, inverse=False):
    """JAX/Pallas equivalent of Upsample_flow.forward."""
    r = int(scale_factor)
    dtype = x.dtype
    itemsize = jnp.dtype(dtype).itemsize

    if inverse:
        B, Lr = x.shape
        assert Lr % r == 0, "length must be divisible by scale_factor"
        L = Lr // r
        assert s.shape == (B, Lr)
    else:
        B, L = x.shape
        Lr = L * r
        assert s.shape == (B, Lr)

    tb, tl, gb, gl, ragged_l = _pick_tiles(B, L, r, itemsize)
    chunk = _LANE if tl % _LANE == 0 else tl
    grid = (gb, gl)
    cp = pltpu.CompilerParams(
        dimension_semantics=("parallel", "parallel"),
        vmem_limit_bytes=_VMEM_LIMIT_BYTES)

    if inverse:
        # 0/1 de-interleave pooling matrix: pool[k, i] = (k // r == i)
        pool = (jnp.arange(chunk * r)[:, None] // r
                == jnp.arange(chunk)[None, :]).astype(dtype)
        kernel = functools.partial(_downsample_kernel, r=r, chunk=chunk,
                                   lr_total=Lr, ragged=ragged_l)
        cost = pl.CostEstimate(
            flops=2 * B * L * chunk * r + B * Lr,
            transcendentals=0,
            bytes_accessed=(2 * B * Lr + B * L + chunk * chunk * r) * itemsize)
        return pl.pallas_call(
            kernel,
            out_shape=jax.ShapeDtypeStruct((B, L), dtype),
            grid=grid,
            in_specs=[
                pl.BlockSpec((tb, tl * r), lambda bi, li: (bi, li)),   # x
                pl.BlockSpec((tb, tl * r), lambda bi, li: (bi, li)),   # s
                pl.BlockSpec((chunk * r, chunk), lambda bi, li: (0, 0)),  # pool
            ],
            out_specs=pl.BlockSpec((tb, tl), lambda bi, li: (bi, li)),
            compiler_params=cp,
            cost_estimate=cost,
        )(x, s, pool)
    else:
        # 0/1 interleave expansion matrix: expand[i, k] = (k // r == i)
        expand = (jnp.arange(chunk)[:, None]
                  == jnp.arange(chunk * r)[None, :] // r).astype(dtype)
        kernel = functools.partial(_upsample_kernel, r=r, chunk=chunk,
                                   l_total=L, ragged=ragged_l)
        cost = pl.CostEstimate(
            flops=2 * B * Lr * chunk + B * Lr,
            transcendentals=0,
            bytes_accessed=(B * L + 2 * B * Lr + chunk * chunk * r) * itemsize)
        return pl.pallas_call(
            kernel,
            out_shape=jax.ShapeDtypeStruct((B, Lr), dtype),
            grid=grid,
            in_specs=[
                pl.BlockSpec((tb, tl), lambda bi, li: (bi, li)),       # x
                pl.BlockSpec((tb, tl * r), lambda bi, li: (bi, li)),   # s
                pl.BlockSpec((chunk, chunk * r), lambda bi, li: (0, 0)),  # expand
            ],
            out_specs=pl.BlockSpec((tb, tl * r), lambda bi, li: (bi, li)),
            compiler_params=cp,
            cost_estimate=cost,
        )(x, s, expand)


# ------------------------------- tests ------------------------------------- #

if __name__ == "__main__":
    key = jax.random.PRNGKey(0)
    k1, k2, k3, k4, k5, k6 = jax.random.split(key, 6)
    r = 4

    # ---- small shapes: single-block path (B=2, L=8) ----
    B, L = 2, 8
    x_fwd = jax.random.normal(k1, (B, L), dtype=jnp.float32)
    s_fwd = jax.random.normal(k2, (B, L * r), dtype=jnp.float32)
    out_fwd = jax.block_until_ready(upsample_flow(x_fwd, s_fwd, r, inverse=False))
    ref_fwd = jnp.repeat(x_fwd, r, axis=1) + s_fwd
    assert out_fwd.shape == (B, L * r)
    assert jnp.allclose(out_fwd, ref_fwd, atol=1e-5), "forward mismatch (small)"

    x_inv = jax.random.normal(k3, (B, L * r), dtype=jnp.float32)
    out_inv = jax.block_until_ready(upsample_flow(x_inv, s_fwd, r, inverse=True))
    ref_inv = (x_inv - s_fwd).reshape(B, L, r).mean(axis=-1)
    assert out_inv.shape == (B, L)
    assert jnp.allclose(out_inv, ref_inv, atol=1e-5), "inverse mismatch (small)"

    # ---- larger shapes: exercises the 2-D tiled, chunked-MXU path (B=16, L=512) ----
    B2, L2 = 16, 512
    x2 = jax.random.normal(k4, (B2, L2), dtype=jnp.float32)
    s2 = jax.random.normal(k5, (B2, L2 * r), dtype=jnp.float32)
    out2 = jax.block_until_ready(upsample_flow(x2, s2, r, inverse=False))
    ref2 = jnp.repeat(x2, r, axis=1) + s2
    assert jnp.allclose(out2, ref2, atol=1e-5), "forward mismatch (tiled)"

    x2i = jax.random.normal(k6, (B2, L2 * r), dtype=jnp.float32)
    out2i = jax.block_until_ready(upsample_flow(x2i, s2, r, inverse=True))
    ref2i = (x2i - s2).reshape(B2, L2, r).mean(axis=-1)
    assert jnp.allclose(out2i, ref2i, atol=1e-5), "inverse mismatch (tiled)"

    print("KERNEL_OK")
</pallas_src>

<mosaic_0001>
module attributes {stable_mosaic.version = 11 : i64} {
  func.func @_upsample_kernel(%arg0: i32, %arg1: i32, %arg2: memref<2x8xf32, #tpu.memory_space<vmem>>, %arg3: memref<2x32xf32, #tpu.memory_space<vmem>>, %arg4: memref<8x32xf32, #tpu.memory_space<vmem>>, %arg5: memref<2x32xf32, #tpu.memory_space<vmem>>) attributes {dimension_semantics = [#tpu.dimension_semantics<parallel>, #tpu.dimension_semantics<parallel>], iteration_bounds = array<i64: 1, 1>, scalar_prefetch = 0 : i64, scratch_operands = 0 : i64, tpu.core_type = #tpu.core_type<tc>, window_params = [{transform_indices = @transform_0, window_bounds = array<i64: 2, 8>}, {transform_indices = @transform_1, window_bounds = array<i64: 2, 32>}, {pipeline_mode = #tpu.pipeline_mode<synchronous>, transform_indices = @transform_2, window_bounds = array<i64: 8, 32>}, {transform_indices = @transform_3, window_bounds = array<i64: 2, 32>}]} {
    %c0 = arith.constant 0 : index
    %c0_0 = arith.constant 0 : index
    %0 = vector.load %arg2[%c0, %c0_0] : memref<2x8xf32, #tpu.memory_space<vmem>>, vector<2x8xf32>
    %c0_1 = arith.constant 0 : index
    %c0_2 = arith.constant 0 : index
    %1 = vector.load %arg4[%c0_1, %c0_2] : memref<8x32xf32, #tpu.memory_space<vmem>>, vector<8x32xf32>
    %cst = arith.constant dense<0.000000e+00> : vector<2x32xf32>
    %2 = tpu.matmul %0, %1, %cst {dimension_numbers = #tpu.dot_dimension_numbers<[1], [0], [0], [1], [0, 0, 1, 1], [], []>} : vector<2x8xf32>, vector<8x32xf32>, vector<2x32xf32> -> vector<2x32xf32>
    %c0_3 = arith.constant 0 : index
    %c0_4 = arith.constant 0 : index
    %3 = vector.load %arg3[%c0_3, %c0_4] : memref<2x32xf32, #tpu.memory_space<vmem>>, vector<2x32xf32>
    %4 = arith.addf %2, %3 : vector<2x32xf32>
    %c0_5 = arith.constant 0 : index
    %c0_6 = arith.constant 0 : index
    %5 = vector.load %arg5[%c0_5, %c0_6] : memref<2x32xf32, #tpu.memory_space<vmem>>, vector<2x32xf32>
    tpu.vector_store %arg5[%c0_5, %c0_6], %4 {strides = array<i32>} : memref<2x32xf32, #tpu.memory_space<vmem>>, vector<2x32xf32>,
    return
  }
  func.func @transform_0(%arg0: i32, %arg1: i32) -> (i32, i32) {
    %c0_i32 = arith.constant 0 : i32
    return %arg0, %arg1 : i32, i32
  }
  func.func @transform_1(%arg0: i32, %arg1: i32) -> (i32, i32) {
    %c0_i32 = arith.constant 0 : i32
    return %arg0, %arg1 : i32, i32
  }
  func.func @transform_2(%arg0: i32, %arg1: i32) -> (i32, i32) {
    %c0_i32 = arith.constant 0 : i32
    %c0_i32_0 = arith.constant 0 : i32
    %c0_i32_1 = arith.constant 0 : i32
    return %c0_i32, %c0_i32_0 : i32, i32
  }
  func.func @transform_3(%arg0: i32, %arg1: i32) -> (i32, i32) {
    %c0_i32 = arith.constant 0 : i32
    return %arg0, %arg1 : i32, i32
  }
}

</mosaic_0001>

<bundles_post_ra>
// kernel: tpu_custom_call.1
= control target key start
LH: loop header
LB: loop body
LE: loop exit
PB: predicated region body
PF: predicated region fallthrough
CT: control target
= control target key end

     0   :  { %8 = vsyncpa [#allocation3], 0  ;;  %s283_s0 = inlined_call_operand.hbm [shape: f32[2,8], index: 0, kind: input, shape index: {}]   ;;  %s284_s1 = inlined_call_operand.vmem [shape: f32[2,32], index: 1, kind: input, shape index: {}]   ;;  %s285_s2 = inlined_call_operand.hbm [shape: f32[8,32], index: 2, kind: input, shape index: {}]   ;;  %s286_s3 = inlined_call_operand.hbm [shape: f32[2,32], index: 3, kind: output, shape index: {}]  }
   0x1   :  { %9 = vsyncpa [#allocation6], 0 }
   0x2   :  { %10 = vsyncpa [#allocation4], 0  ;;  %s219_s12 = smov [#allocation2]   ;;  %s220_s14 = smov [#allocation5]  }
   0x3   :  { %s17_s13 = sshll.u32 %s219_s12, 4  ;;  %s29_s15 = sshll.u32 %s220_s14, 4  ;;  %s18_s13 = int_to_ptr.vmem [resolvable:$true] %s17_s13  ;;  %s30_s15 = int_to_ptr.vmem [resolvable:$true] %s29_s15 }
   0x4   :  { %s147_s18 = scalar_lea.hbm %s283_s0, 32 }
   0x5   :  { %p148_p0 = scmp.ne.s32.totalorder %s283_s0, %s147_s18  ;;  %p151_p1 = scmp.lt.u32.totalorder %s147_s18, %s283_s0 }
   0x7   :  { %p153_p2 = pnand %p151_p1, %p148_p0 }
   0x9   :  { %156 = shalt.err (!%p153_p2)
}
   0xa   :  { %s157_s23 = scalar_lea.vmem %s18_s13, 32  ;;  %p162_p4 = scmp.lt.s32.totalorder %s18_s13, %s18_s13 }
   0xb   :  { %p158_p3 = scmp.ne.s32.totalorder %s18_s13, %s157_s23  ;;  %p163_p5 = scmp.lt.s32.totalorder %s157_s23, %s157_s23 }
   0xd   :  { %p164_p6 = por %p163_p5, %p162_p4 }
   0xf   :  { %p165_p7 = pnand %p164_p6, %p158_p3 }
  0x11   :  { %168 = shalt.err (!%p165_p7)
}
  0x12   :  { %20 = dma.hbm_to_vmem [thread:$0]  %s283_s0, 32, %s18_s13, [#allocation3]  }
  0x13   :  { %s169_s28 = scalar_lea.hbm %s285_s2, 128 }
  0x14   :  { %p170_p8 = scmp.ne.s32.totalorder %s285_s2, %s169_s28  ;;  %p173_p9 = scmp.lt.u32.totalorder %s169_s28, %s285_s2 }
  0x16   :  { %p175_p10 = pnand %p173_p9, %p170_p8 }
  0x18   :  { %178 = shalt.err (!%p175_p10)
}
  0x19   :  { %s179_s6 = scalar_lea.vmem %s30_s15, 128  ;;  %p184_p12 = scmp.lt.s32.totalorder %s30_s15, %s30_s15 }
  0x1a   :  { %p180_p11 = scmp.ne.s32.totalorder %s30_s15, %s179_s6  ;;  %p185_p13 = scmp.lt.s32.totalorder %s179_s6, %s179_s6 }
  0x1c   :  { %p186_p0 = por %p185_p13, %p184_p12 }
  0x1e   :  { %p187_p1 = pnand %p186_p0, %p180_p11 }
  0x20   :  { %190 = shalt.err (!%p187_p1)
}
  0x21   :  { %32 = dma.hbm_to_vmem [thread:$0]  %s285_s2, 128, %s30_s15, [#allocation6]  }
  0x22   :  { %213 = dma.done.wait [#allocation3], 32  }
  0x23   :  { %214 = vsyncadd [#allocation3], 4294967264 }
  0x24   :  { %215 = dma.done.wait [#allocation6], 128  }
  0x25   :  { %216 = vsyncadd [#allocation6], 4294967168  ;;  %v221_v0 = vmov 0.0   ;;  %vm222_vm0 = vmmov 0   ;;  %vm42_vm1 = vcmask 64512   ;;  %v40_v1 = vld [vmem:[#allocation5] sm:$0xff] }
  0x26   :  { %137 = vmatprep.subr.mxu0 %v221_v0  ;;  %139 = vmatprep.mubr.msk.f32.mxu0 %vm222_vm0, %v221_v0  ;;  %v39_v2 = vld [vmem:[#allocation2] sm:$0x3]  ;;  %s223_s10 = smov [#allocation7]   ;;  %vm116_vm2 = vcmask 254976  }
  0x27   :  { %138 = vmatpush3.msra.mxu0 %v40_v1  ;;  %v41_v3 = vld [vmem:[%s284_s1] sm:$0x3]  ;;  %s124_s11 = sshll.u32 %s223_s10, 4  ;;  %s125_s11 = int_to_ptr.vmem [resolvable:$true] %s124_s11 }
  0x28   :  { %140 = vmatmul.mubr.msk.f32.vlgmr.msra.gmra.mrb[0].mxu0 %vm42_vm1, %v39_v2  ;;  %s191_s2 = scalar_lea.vmem %s125_s11, 32  ;;  %p196_p3 = scmp.lt.s32.totalorder %s125_s11, %s125_s11 }
  0x29   :  { %p192_p2 = scmp.ne.s32.totalorder %s125_s11, %s191_s2  ;;  %p197_p4 = scmp.lt.s32.totalorder %s191_s2, %s191_s2 }
  0x2b   :  { %p198_p5 = por %p197_p4, %p196_p3 }
  0x2d   :  { %p199_p6 = pnand %p198_p5, %p192_p2 }
  0xfb   :  { %v112_v4 = vpop.f32.mrb[0].mxu0 }
  0xfc   :  { %v113_v5 = vadd.f32 %v112_v4, %v41_v3  ;;  %v141_v6 = vpop.f32.mrb[1].mxu0 }
  0xfe   :  { %117 = vst.msk [vmem:[#allocation7] sm:$0x3] %vm116_vm2, %v113_v5 }
  0xff   :  { %202 = shalt.err (!%p199_p6)
}
 0x100   :  { %s203_s14 = scalar_lea.hbm %s286_s3, 32 }
 0x101   :  { %p204_p7 = scmp.ne.s32.totalorder %s286_s3, %s203_s14  ;;  %p207_p8 = scmp.lt.u32.totalorder %s203_s14, %s286_s3 }
 0x103   :  { %p209_p9 = pnand %p207_p8, %p204_p7 }
 0x105   :  { %212 = shalt.err (!%p209_p9)
}
 0x106   :  { %127 = dma.vmem_to_hbm [thread:$0]  %s125_s11, 32, %s286_s3, [#allocation4]  }
 0x107   :  { %217 = dma.done.wait [#allocation4], 32  }
 0x108   :  { %218 = vsyncadd [#allocation4], 4294967264 }
 0x109   :  { %131 = vsyncpa [#allocation3], 1 }
 0x10a   :  { %132 = vsyncpa [#allocation6], 1 }
 0x10b   :  { %133 = vsyncpa [#allocation4], 1 }

</bundles_post_ra>
